<compile_context>
chip_gen: v6e
topology: v6e:2x2x1
jax: 0.10.0
libtpu: 0.0.40
codegen_flags: <defaults>
</compile_context>

<pallas_src>
import math
import functools

import jax
import jax.numpy as jnp
from jax import lax
from jax.experimental import pallas as pl
from jax.experimental.pallas import tpu as pltpu

# Large finite negative mask value: bf16-safe and avoids inf-inf = NaN.
_MASK_VALUE = -1e30


def _divisor_tiles(T, candidates=(512, 256, 128, 64, 32, 16, 8)):
    """Tile sizes from `candidates` that divide T (largest first)."""
    tiles = [c for c in candidates if T % c == 0]
    return tiles if tiles else [T]


def _lane(n):
    """Lane-padded extent (last dim is padded to a multiple of 128 in VMEM)."""
    return ((n + 127) // 128) * 128


def _vmem_cap_bytes():
    """Physical per-core VMEM; fall back to the smallest (v7x: 64 MiB)."""
    try:
        return int(pltpu.get_tpu_info().vmem_capacity_bytes)
    except Exception:
        return 64 << 20


# --------------------------------------------------------------------------
# Kernel 1: fused QKV projection, head-major output, q pre-scaled.
#   out[b, 3H, T, hd]  with heads 0..H-1 = q (scaled), H..2H-1 = k, 2H..3H-1 = v
# --------------------------------------------------------------------------
def _qkv_proj_kernel(x_ref, w_ref, b_ref, o_ref, *, hd, C, q_scale):
    TM = x_ref.shape[1]
    TN = w_ref.shape[1]

    y = jnp.dot(x_ref[0], w_ref[...], preferred_element_type=jnp.float32)
    y = y + b_ref[...]                                            # (TM, TN) f32

    # Fold 1/sqrt(hd) into the q columns (global column < C) once, here, so
    # the attention kernel never rescales q per KV step.
    n = pl.program_id(2)
    col = n * TN + lax.broadcasted_iota(jnp.int32, (1, TN), 1)
    y = y * jnp.where(col < C, jnp.float32(q_scale), jnp.float32(1.0))

    # Head-major relayout: done once per element here (amortized over every
    # KV step of the attention kernel instead of repeated there).
    y_h = jnp.transpose(y.reshape(TM, TN // hd, hd), (1, 0, 2))   # (TN/hd, TM, hd)
    o_ref[0] = y_h.astype(o_ref.dtype)


def _qkv_projection_heads(x, w_attn, b_attn, n_head):
    B, T, C = x.shape
    H = n_head
    hd = C // H
    dsize = x.dtype.itemsize
    cap = _vmem_cap_bytes()

    TM = _divisor_tiles(T, (256, 128, 64, 32, 16, 8))[0]

    # Tile the 3C output dim when the full W_attn block would dominate VMEM.
    # A tile must stay inside one q/k/v segment (divide C), cover whole heads
    # and keep 128-lane alignment; otherwise fall back to the full 3C width.
    TN = 3 * C
    w_budget = cap // 8
    if dsize * C * 3 * C > w_budget:
        for tn in (2048, 1024, 512, 256, 128):
            if C % tn == 0 and tn % hd == 0:
                TN = tn
                if dsize * C * tn <= w_budget:
                    break

    est = int(2 * dsize * TM * _lane(C)                     # x blocks (dbl-buffered)
              + 2 * dsize * C * _lane(TN)                   # W blocks
              + 2 * dsize * _lane(TN)                       # bias blocks
              + 2 * dsize * (TN // hd) * TM * _lane(hd)     # output blocks
              + 4 * TM * _lane(TN)                          # f32 matmul temp
              + 4 * (TN // hd) * TM * _lane(hd))            # relayout temp
    vmem_lim = int(min(cap * 3 // 4, est + (16 << 20)))

    cost = pl.CostEstimate(
        flops=int(2 * B * T * C * 3 * C),
        transcendentals=0,
        bytes_accessed=int(dsize * (4 * B * T * C + 3 * C * C + 3 * C)))

    kernel = functools.partial(_qkv_proj_kernel, hd=hd, C=C,
                               q_scale=1.0 / math.sqrt(hd))
    return pl.pallas_call(
        kernel,
        out_shape=jax.ShapeDtypeStruct((B, 3 * H, T, hd), x.dtype),
        grid_spec=pltpu.PrefetchScalarGridSpec(
            num_scalar_prefetch=0,
            grid=(B, T // TM, (3 * C) // TN),
            in_specs=[
                pl.BlockSpec((1, TM, C), lambda b, i, n: (b, i, 0)),   # x tile
                pl.BlockSpec((C, TN), lambda b, i, n: (0, n)),         # W_attn tile
                pl.BlockSpec((1, TN), lambda b, i, n: (0, n)),         # b_attn tile
            ],
            out_specs=pl.BlockSpec((1, TN // hd, TM, hd),
                                   lambda b, i, n: (b, n, i, 0)),
        ),
        compiler_params=pltpu.CompilerParams(
            dimension_semantics=("parallel", "parallel", "parallel"),
            vmem_limit_bytes=vmem_lim),
        cost_estimate=cost,
    )(x, w_attn, b_attn)


# --------------------------------------------------------------------------
# Kernel 2: flash attention (online softmax) over a flattened triangular
# (q-tile, kv-tile) grid + fused output projection.
# --------------------------------------------------------------------------
def _flash_attn_proj_kernel(qi_ref, ki_ref, q_ref, k_ref, v_ref, wp_ref, bp_ref,
                            o_ref, m_scr, l_scr, acc_scr, *, TQ, TK):
    C = wp_ref.shape[0]

    step = pl.program_id(1)
    qi = qi_ref[step]
    ki = ki_ref[step]
    q_start = qi * TQ
    k_start = ki * TK

    @pl.when(ki == 0)
    def _init():
        m_scr[...] = jnp.full(m_scr.shape, _MASK_VALUE, jnp.float32)
        l_scr[...] = jnp.zeros(l_scr.shape, jnp.float32)
        acc_scr[...] = jnp.zeros(acc_scr.shape, jnp.float32)

    def _scores():
        # q arrives pre-scaled and head-major from kernel 1: one batched MXU
        # matmul, no per-step reshape/transpose of k or v.
        return jnp.einsum('hqd,hkd->hqk', q_ref[0], k_ref[0],
                          preferred_element_type=jnp.float32)     # (H,TQ,TK) f32

    def _update(s):
        m_prev = m_scr[...]                                       # (H, TQ)
        m_new = jnp.maximum(m_prev, jnp.max(s, axis=-1))
        alpha = jnp.exp(m_prev - m_new)
        p = jnp.exp(s - m_new[:, :, None])                        # (H, TQ, TK)
        l_scr[...] = alpha * l_scr[...] + jnp.sum(p, axis=-1)
        acc_scr[...] = alpha[:, :, None] * acc_scr[...] + jnp.einsum(
            'hqk,hkd->hqd', p.astype(v_ref.dtype), v_ref[0],
            preferred_element_type=jnp.float32)
        m_scr[...] = m_new

    # The triangular grid never visits fully-masked tiles; only tiles that
    # straddle the diagonal need the mask, everything else is a fast path.
    straddles = (k_start + (TK - 1)) > q_start

    @pl.when(straddles)
    def _masked():
        s = _scores()
        row = q_start + lax.broadcasted_iota(jnp.int32, (TQ, TK), 0)
        col = k_start + lax.broadcasted_iota(jnp.int32, (TQ, TK), 1)
        _update(jnp.where((row >= col)[None], s, _MASK_VALUE))

    @pl.when(jnp.logical_not(straddles))
    def _unmasked():
        _update(_scores())

    # Last KV tile for this q tile: normalize and apply the fused projection.
    @pl.when(ki == (q_start + (TQ - 1)) // TK)
    def _finalize():
        inv_l = pl.reciprocal(l_scr[...], approx=True)            # EUP slot
        o = acc_scr[...] * inv_l[:, :, None]                      # (H,TQ,hd) f32
        o = jnp.transpose(o, (1, 0, 2)).reshape(TQ, C).astype(wp_ref.dtype)
        y = jnp.dot(o, wp_ref[...], preferred_element_type=jnp.float32)
        o_ref[0] = (y + bp_ref[...]).astype(o_ref.dtype)          # lane-dense (TQ,C)


def _attn_vmem_est(H, TQ, TK, hd, C, dsize):
    blocks = 2 * dsize * H * (TQ + 2 * TK) * _lane(hd)     # q,k,v (dbl-buffered)
    blocks += 2 * dsize * TQ * _lane(C)                    # output (dbl-buffered)
    weights = dsize * (C * _lane(C) + _lane(C))            # W_proj + b_proj
    scratch = 4 * (H * TQ * _lane(hd) + 2 * H * _lane(TQ))  # acc + m,l
    temps = 2 * 4 * H * TQ * _lane(TK)                     # s and p (f32)
    temps += 4 * TQ * _lane(C) + 4 * H * TQ * _lane(hd)    # proj temp + relayout
    return int(blocks + weights + scratch + temps)


def _flash_attention_proj(qkv_h, w_proj, b_proj, n_head, out_dtype,
                          q_tile=None, kv_tile=None):
    B, threeH, T, hd = qkv_h.shape
    H = n_head
    assert threeH == 3 * H
    C = H * hd
    dsize = qkv_h.dtype.itemsize
    cap = _vmem_cap_bytes()
    budget = int(cap * 0.55)

    tiles = _divisor_tiles(T)
    # TK stays MXU-shaped (it is the N dim of QK^T and the contraction dim of
    # PV); TQ grows to the VMEM budget since K/V re-streaming scales as T/TQ.
    TK = kv_tile if kv_tile is not None else next(
        (t for t in tiles if t <= 256), tiles[-1])
    if q_tile is not None:
        TQ = q_tile
    else:
        TQ = tiles[-1]
        for t in tiles:
            if _attn_vmem_est(H, t, TK, hd, C, dsize) <= budget:
                TQ = t
                break
    assert T % TQ == 0 and T % TK == 0

    # Flattened lower-triangular schedule (q-tile major, kv-tile inner):
    # fully-masked tiles are never visited and never DMA'd.
    nq, nk = T // TQ, T // TK
    pairs = [(q, k) for q in range(nq) for k in range(nk)
             if k * TK <= q * TQ + TQ - 1]
    qi_tab = jnp.asarray([p[0] for p in pairs], dtype=jnp.int32)
    ki_tab = jnp.asarray([p[1] for p in pairs], dtype=jnp.int32)
    n_steps = len(pairs)

    est = _attn_vmem_est(H, TQ, TK, hd, C, dsize)
    vmem_lim = int(min(cap * 3 // 4, est + (16 << 20)))

    cost = pl.CostEstimate(
        flops=int(B * (n_steps * 4 * H * TQ * TK * hd + nq * 2 * TQ * C * C)),
        transcendentals=int(B * n_steps * H * TQ * TK),
        bytes_accessed=int(dsize * B * (nq * H * TQ * hd
                                        + 2 * n_steps * H * TK * hd
                                        + T * C)
                           + dsize * (C * C + C)))

    kernel = functools.partial(_flash_attn_proj_kernel, TQ=TQ, TK=TK)
    return pl.pallas_call(
        kernel,
        out_shape=jax.ShapeDtypeStruct((B, T, C), out_dtype),
        grid_spec=pltpu.PrefetchScalarGridSpec(
            num_scalar_prefetch=2,                       # qi_tab, ki_tab (SMEM)
            grid=(B, n_steps),
            in_specs=[
                # q / k / v are head-major slices of the fused QKV tensor:
                # head-axis block index 0 / 1 / 2 selects q / k / v.
                pl.BlockSpec((1, H, TQ, hd), lambda b, s, qi, ki: (b, 0, qi[s], 0)),
                pl.BlockSpec((1, H, TK, hd), lambda b, s, qi, ki: (b, 1, ki[s], 0)),
                pl.BlockSpec((1, H, TK, hd), lambda b, s, qi, ki: (b, 2, ki[s], 0)),
                # NOTE: raise k/v depth with pipeline_mode=pl.Buffered(3) if
                # profiling shows exposed DMA (re-check the VMEM budget first).
                pl.BlockSpec((C, C), lambda b, s, qi, ki: (0, 0)),     # W_proj
                pl.BlockSpec((1, C), lambda b, s, qi, ki: (0, 0)),     # b_proj
            ],
            out_specs=pl.BlockSpec((1, TQ, C), lambda b, s, qi, ki: (b, qi[s], 0)),
            scratch_shapes=[
                pltpu.VMEM((H, TQ), jnp.float32),       # running max  m
                pltpu.VMEM((H, TQ), jnp.float32),       # running sum  l
                pltpu.VMEM((H, TQ, hd), jnp.float32),   # f32 PV accumulator
            ],
        ),
        compiler_params=pltpu.CompilerParams(
            # B is parallel (megacore sharding); the flattened triangular axis
            # carries the online-softmax recurrence -> arbitrary.
            # TODO(synk): if B*(T/TQ) < 2 on v7x, add heads as an extra
            # parallel grid axis so both TensorCores get work.
            dimension_semantics=("parallel", "arbitrary"),
            vmem_limit_bytes=vmem_lim),
        cost_estimate=cost,
    )(qi_tab, ki_tab, qkv_h, qkv_h, qkv_h, w_proj, b_proj)


# --------------------------------------------------------------------------
# Public forward pass (matches the PyTorch CausalSelfAttention module)
# --------------------------------------------------------------------------
def causal_self_attention(x, w_attn, b_attn, w_proj, b_proj, *, n_head,
                          compute_dtype=None, q_tile=None, kv_tile=None):
    """y = c_proj(causal_sdpa(split_heads(c_attn(x)))).

    compute_dtype: optionally cast activations/weights (e.g. jnp.bfloat16) so
    the MXU runs at its bf16 peak; softmax statistics and all accumulators
    remain f32 either way.
    """
    B, T, C = x.shape
    assert C % n_head == 0
    if compute_dtype is not None:
        x = x.astype(compute_dtype)
        w_attn = w_attn.astype(compute_dtype)
        b_attn = b_attn.astype(compute_dtype)
        w_proj = w_proj.astype(compute_dtype)
        b_proj = b_proj.astype(compute_dtype)
    b_attn = b_attn.reshape(1, 3 * C)
    b_proj = b_proj.reshape(1, C)

    qkv_h = _qkv_projection_heads(x, w_attn, b_attn, n_head)
    return _flash_attention_proj(qkv_h, w_proj, b_proj, n_head, x.dtype,
                                 q_tile=q_tile, kv_tile=kv_tile)


def reference_attention(x, w_attn, b_attn, w_proj, b_proj, n_head):
    """Pure-JAX reference matching the PyTorch module semantics."""
    B, T, C = x.shape
    hd = C // n_head
    qkv = x.astype(jnp.float32) @ w_attn + b_attn.reshape(1, -1)  # (B, T, 3C)
    q, k, v = jnp.split(qkv, 3, axis=-1)

    def heads(t):  # (B, T, C) -> (B, nh, T, hd)
        return t.reshape(B, T, n_head, hd).transpose(0, 2, 1, 3)

    q, k, v = heads(q), heads(k), heads(v)
    s = jnp.einsum("bhqd,bhkd->bhqk", q, k) / math.sqrt(hd)
    mask = jnp.tril(jnp.ones((T, T), dtype=bool))
    s = jnp.where(mask[None, None], s, -jnp.inf)
    p = jax.nn.softmax(s, axis=-1)
    y = jnp.einsum("bhqk,bhkd->bhqd", p, v)
    y = y.transpose(0, 2, 1, 3).reshape(B, T, C)
    return y @ w_proj + b_proj.reshape(1, -1)


if __name__ == "__main__":
    # Small config consistent with the module: B=2, T=8, n_embd=32, n_head=4.
    B, T, C, n_head = 2, 8, 32, 4

    key = jax.random.PRNGKey(0)
    k_x, k_wa, k_ba, k_wp, k_bp = jax.random.split(key, 5)

    x = jax.random.normal(k_x, (B, T, C), dtype=jnp.float32)
    # nn.Linear parameters, stored transposed: y = x @ W + b; biases 1-D.
    w_attn = 0.02 * jax.random.normal(k_wa, (C, 3 * C), dtype=jnp.float32)
    b_attn = 0.02 * jax.random.normal(k_ba, (3 * C,), dtype=jnp.float32)
    w_proj = 0.02 * jax.random.normal(k_wp, (C, C), dtype=jnp.float32)
    b_proj = 0.02 * jax.random.normal(k_bp, (C,), dtype=jnp.float32)

    ref = reference_attention(x, w_attn, b_attn, w_proj, b_proj, n_head)

    # f32 run (single-tile triangular grid).
    out = causal_self_attention(x, w_attn, b_attn, w_proj, b_proj,
                                n_head=n_head)
    out = jax.block_until_ready(out)
    assert out.shape == (B, T, C)
    assert jnp.allclose(out, ref, atol=1e-3, rtol=1e-3), \
        f"max abs diff = {jnp.max(jnp.abs(out - ref))}"

    # Multi-tile run: exercises the flattened lower-triangular schedule,
    # masked + unmasked tile paths and the per-q-tile finalize.
    T2 = 64
    x2 = jax.random.normal(jax.random.PRNGKey(1), (B, T2, C), dtype=jnp.float32)
    ref2 = reference_attention(x2, w_attn, b_attn, w_proj, b_proj, n_head)
    out2 = causal_self_attention(x2, w_attn, b_attn, w_proj, b_proj,
                                 n_head=n_head, q_tile=16, kv_tile=16)
    out2 = jax.block_until_ready(out2)
    assert jnp.allclose(out2, ref2, atol=1e-3, rtol=1e-3), \
        f"max abs diff (multi-tile) = {jnp.max(jnp.abs(out2 - ref2))}"

    # bf16 MXU-operand run (f32 statistics/accumulators inside the kernels).
    out_bf16 = causal_self_attention(x, w_attn, b_attn, w_proj, b_proj,
                                     n_head=n_head, compute_dtype=jnp.bfloat16)
    out_bf16 = jax.block_until_ready(out_bf16)
    assert out_bf16.dtype == jnp.bfloat16
    assert jnp.allclose(out_bf16.astype(jnp.float32), ref, atol=5e-2, rtol=5e-2), \
        f"max abs diff (bf16) = {jnp.max(jnp.abs(out_bf16.astype(jnp.float32) - ref))}"

    print("KERNEL_OK")
</pallas_src>

<mosaic_0001>
module attributes {stable_mosaic.version = 11 : i64} {
  func.func @_qkv_proj_kernel(%arg0: i32, %arg1: i32, %arg2: i32, %arg3: memref<1x8x32xf32, #tpu.memory_space<vmem>>, %arg4: memref<32x96xf32, #tpu.memory_space<vmem>>, %arg5: memref<1x96xf32, #tpu.memory_space<vmem>>, %arg6: memref<1x12x8x8xf32, #tpu.memory_space<vmem>>) attributes {dimension_semantics = [#tpu.dimension_semantics<parallel>, #tpu.dimension_semantics<parallel>, #tpu.dimension_semantics<parallel>], iteration_bounds = array<i64: 2, 1, 1>, scalar_prefetch = 0 : i64, scratch_operands = 0 : i64, tpu.core_type = #tpu.core_type<tc>, window_params = [{transform_indices = @transform_0, window_bounds = array<i64: 1, 8, 32>}, {transform_indices = @transform_1, window_bounds = array<i64: 32, 96>}, {transform_indices = @transform_2, window_bounds = array<i64: 1, 96>}, {transform_indices = @transform_3, window_bounds = array<i64: 1, 12, 8, 8>}]} {
    %c0 = arith.constant 0 : index
    %c0_0 = arith.constant 0 : index
    %c0_1 = arith.constant 0 : index
    %0 = vector.load %arg3[%c0, %c0_0, %c0_1] : memref<1x8x32xf32, #tpu.memory_space<vmem>>, vector<1x8x32xf32>
    %1 = vector.shape_cast %0 : vector<1x8x32xf32> to vector<8x32xf32>
    %c0_2 = arith.constant 0 : index
    %c0_3 = arith.constant 0 : index
    %2 = vector.load %arg4[%c0_2, %c0_3] : memref<32x96xf32, #tpu.memory_space<vmem>>, vector<32x96xf32>
    %cst = arith.constant dense<0.000000e+00> : vector<8x96xf32>
    %3 = tpu.matmul %1, %2, %cst {dimension_numbers = #tpu.dot_dimension_numbers<[1], [0], [0], [1], [0, 0, 1, 1], [], []>} : vector<8x32xf32>, vector<32x96xf32>, vector<8x96xf32> -> vector<8x96xf32>
    %c0_4 = arith.constant 0 : index
    %c0_5 = arith.constant 0 : index
    %4 = vector.load %arg5[%c0_4, %c0_5] : memref<1x96xf32, #tpu.memory_space<vmem>>, vector<1x96xf32>
    %5 = vector.broadcast %4 : vector<1x96xf32> to vector<8x96xf32>
    %6 = arith.addf %3, %5 : vector<8x96xf32>
    %c96_i32 = arith.constant 96 : i32
    %7 = arith.muli %arg2, %c96_i32 : i32
    %8 = tpu.iota {dimensions = array<i32: 1>} : vector<1x96xi32>
    %9 = vector.broadcast %7 : i32 to vector<1x96xi32>
    %10 = arith.addi %9, %8 : vector<1x96xi32>
    %c32_i32 = arith.constant 32 : i32
    %11 = vector.broadcast %c32_i32 : i32 to vector<1x96xi32>
    %12 = arith.cmpi slt, %10, %11 : vector<1x96xi32>
    %cst_6 = arith.constant 0.353553385 : f32
    %cst_7 = arith.constant 1.000000e+00 : f32
    %13 = vector.broadcast %cst_6 : f32 to vector<1x96xf32>
    %14 = vector.broadcast %cst_7 : f32 to vector<1x96xf32>
    %15 = arith.select %12, %13, %14 : vector<1x96xi1>, vector<1x96xf32>
    %16 = vector.broadcast %15 : vector<1x96xf32> to vector<8x96xf32>
    %17 = arith.mulf %6, %16 : vector<8x96xf32>
    %18 = vector.shape_cast %17 : vector<8x96xf32> to vector<8x12x8xf32>
    %19 = tpu.transpose %18, [1, 0, 2] : vector<8x12x8xf32> -> vector<12x8x8xf32>
    %c0_8 = arith.constant 0 : index
    %c0_9 = arith.constant 0 : index
    %c0_10 = arith.constant 0 : index
    %c0_11 = arith.constant 0 : index
    %20 = vector.load %arg6[%c0_8, %c0_9, %c0_10, %c0_11] : memref<1x12x8x8xf32, #tpu.memory_space<vmem>>, vector<1x12x8x8xf32>
    %21 = vector.shape_cast %20 : vector<1x12x8x8xf32> to vector<12x8x8xf32>
    %22 = vector.shape_cast %19 : vector<12x8x8xf32> to vector<1x12x8x8xf32>
    tpu.vector_store %arg6[%c0_8, %c0_9, %c0_10, %c0_11], %22 {strides = array<i32>} : memref<1x12x8x8xf32, #tpu.memory_space<vmem>>, vector<1x12x8x8xf32>,
    return
  }
  func.func @transform_0(%arg0: i32, %arg1: i32, %arg2: i32) -> (i32, i32, i32) {
    %c0_i32 = arith.constant 0 : i32
    %c0_i32_0 = arith.constant 0 : i32
    return %arg0, %arg1, %c0_i32 : i32, i32, i32
  }
  func.func @transform_1(%arg0: i32, %arg1: i32, %arg2: i32) -> (i32, i32) {
    %c0_i32 = arith.constant 0 : i32
    %c0_i32_0 = arith.constant 0 : i32
    return %c0_i32, %arg2 : i32, i32
  }
  func.func @transform_2(%arg0: i32, %arg1: i32, %arg2: i32) -> (i32, i32) {
    %c0_i32 = arith.constant 0 : i32
    %c0_i32_0 = arith.constant 0 : i32
    return %c0_i32, %arg2 : i32, i32
  }
  func.func @transform_3(%arg0: i32, %arg1: i32, %arg2: i32) -> (i32, i32, i32, i32) {
    %c0_i32 = arith.constant 0 : i32
    %c0_i32_0 = arith.constant 0 : i32
    return %arg0, %arg2, %arg1, %c0_i32 : i32, i32, i32, i32
  }
}

</mosaic_0001>

<bundles_post_ra>
// kernel: tpu_custom_call.1
= control target key start
LH: loop header
LB: loop body
LE: loop exit
PB: predicated region body
PF: predicated region fallthrough
CT: control target
= control target key end

     0   :  { %8 = vsyncpa [#allocation3], 0  ;;  %s1426_s0 = inlined_call_operand.hbm [shape: f32[2,8,32], index: 0, kind: input, shape index: {}]   ;;  %s1427_s1 = inlined_call_operand.hbm [shape: f32[32,96], index: 1, kind: input, shape index: {}]   ;;  %s1428_s2 = inlined_call_operand.vmem [shape: f32[1,96], index: 2, kind: input, shape index: {}]   ;;  %s1429_s3 = inlined_call_operand.vmem [shape: f32[2,12,8,8], index: 3, kind: output, shape index: {}]  }
   0x1   :  { %10 = vsyncpa [#allocation3 + $0x1], 0 }
   0x2   :  { %11 = vsyncpa [#allocation5], 0  ;;  %s1221_s12 = smov 0   ;;  %s1223_s13 = smov 0  }
   0x3   :  { %s1225_s14 = smov 0   ;;  %s1227_s15 = smov 0  }
   0x4   :  { %s1229_s16 = smov 0   ;;  %s1231_s17 = smov 0  }
   0x5 LB: > { %s944_s18 = sadd.s32 4294967295, %s1179_s17   ;;  %p58_p0 = scmp.ne.s32.totalorder %s1163_s13, %s1159_s12  ;;  %s1179_s17 = sphi %s1231_s17, %s17_s17   ;;  %s1175_s16 = sphi %s1229_s16, %s1439_s16   ;;  %s1171_s15 = sphi %s1227_s15, %s1438_s15   ;;  %s1167_s14 = sphi %s1225_s14, %s1437_s14   ;;  %s1163_s13 = sphi %s1223_s13, %s1436_s13   ;;  %s1159_s12 = sphi %s1221_s12, %s1435_s12  }
   0x6   : > { %p1251_p1 = scmp.eq.s32.totalorder %s944_s18, 0  ;;  %p946_p2 = scmp.ge.s32.totalorder %s1179_s17, 1 }
   0x7   : > { %p151_p3 = scmp.lt.s32.totalorder %s1179_s17, 3  ;;  %s1181_s22 = smov [#allocation4]  }
   0x8   : > { %p1259_p4 = por %p1251_p1, %p58_p0  ;;  %s165_s23 = sshll.u32 %s1181_s22, 4  ;;  %s166_s23 = int_to_ptr.vmem [resolvable:$true] %s165_s23 }
   0x9   : > { %p1263_p5 = pnand %p946_p2, %p151_p3  ;;  %s36_s25 = sadd.s32 1, %s1175_s16 }
   0xa   : > { %s1082_s26 = scalar_lea.vmem %s166_s23, 512  ;;  %p1090_p12 = scmp.lt.s32.totalorder %s166_s23, %s166_s23 }
   0xb   : > { %p993_p6 = pneg %p1263_p5  ;;  %p1083_p9 = scmp.ne.s32.totalorder %s166_s23, %s1082_s26 }
   0xc   : > { %p1091_p13 = scmp.lt.s32.totalorder %s1082_s26, %s1082_s26 }
   0xd   : > { %p1271_p7 = pnand %p993_p6, %p1251_p1 }
   0xe   : > { %p1092_p0 = por %p1091_p13, %p1090_p12 }
   0xf   : > { %p1073_p8 = pneg %p1271_p7 }
  0x11   : > { %p1085_p10 = pnand %p1083_p9, %p1073_p8 }
  0x13   : > { %p1086_p11 = pneg %p1085_p10 }
  0x15   : > { %p1093_p2 = pnand %p1092_p0, %p1086_p11 }
  0x17   : > { %1096 = shalt.err (!%p1093_p2)
}
  0x18   : > { %s1182_s27 = smov 128   ;;  %s1183_s28 = smov 8  }
  0x19   : > { %996 = dma.hbm_to_vmem [thread:$0]  (!%p1271_p7), %s1427_s1, 512, %s166_s23, [#allocation5], %s1182_s27, %s1182_s27, %s1183_s28  }
  0x1a   : > { %p38_p3 = scmp.ge.s32.totalorder %s36_s25, 2  ;;  %s45_s4 = sadd.s32 1, %s1167_s14 }
  0x1b   : > { %p52_p6 = scmp.ne.s32.totalorder %s1167_s14, %s1163_s13  ;;  %p53_p8 = scmp.eq.s32.totalorder %s1179_s17, 0 }
  0x1c   : > { %s1441_s25 = smov (%p38_p3, %s36_s25), 0  ;;  %p1002_p10 = scmp.lt.s32.totalorder %s1179_s17, 2 }
  0x1d   : > { %p54_p9 = por %p53_p8, %p52_p6  ;;  %s40_s5 = ssub.s32 %s1175_s16, %s1441_s25 }
  0x1e   : > { %s185_s6 = sand.u32 1, %s1167_s14   ;;  %p43_p11 = scmp.eq.s32.totalorder %s40_s5, 0 }
  0x1f   : > { %s950_s7 = sshll.u32 %s185_s6, 3  ;;  %s951_s8 = sshll.u32 %s1175_s16, 7 }
  0x20   : > { %s1295_s9 = scalar_select %p43_p11, %s1167_s14, %s45_s4  }
  0x21   : > { %s195_s12 = scalar_lea.hbm %s1426_s0, %s951_s8  ;;  %s189_s18 = scalar_lea.vmem [#allocation2], %s950_s7 }
  0x22   : > { %s197_s22 = sshll.u32 %s189_s18, 4  ;;  %p1300_p7 = pnand %p1002_p10, %p54_p9  ;;  %s198_s22 = int_to_ptr.vmem [resolvable:$true] %s197_s22 }
  0x23   : > { %s186_s24 = scalar_lea.sflag [#allocation3], %s185_s6  ;;  %s1110_s26 = scalar_lea.vmem %s198_s22, 128 }
  0x24   : > { %p1099_p12 = pneg %p1300_p7  ;;  %p1111_p13 = scmp.ne.s32.totalorder %s198_s22, %s1110_s26 }
  0x25   : > { %s1184_s27 = smov [#allocation2]  }
  0x26   : > { %p1113_p0 = pnand %p1111_p13, %p1099_p12  ;;  %s1115_s28 = sshll.u32 %s1184_s27, 4  ;;  %s1116_s28 = int_to_ptr.vmem [resolvable:$false] %s1115_s28 }
  0x27   : > { %s1117_s29 = scalar_lea.vmem %s1116_s28, 256  ;;  %p1118_p3 = scmp.lt.s32.totalorder %s198_s22, %s1116_s28 }
  0x28   : > { %p1114_p2 = pneg %p1113_p0  ;;  %p1119_p6 = scmp.lt.s32.totalorder %s1117_s29, %s1110_s26 }
  0x2a   : > { %p1120_p8 = por %p1119_p6, %p1118_p3 }
  0x2c   : > { %p1121_p9 = pnand %p1120_p8, %p1114_p2 }
  0x2e   : > { %1124 = shalt.err (!%p1121_p9)
}
  0x2f   : > { %1000 = dma.hbm_to_vmem [thread:$0]  (!%p1300_p7), %s195_s12, 128, %s198_s22, %s186_s24  }
  0x30   : > { %206 = sbr.rel (%p1263_p5) target bundleno = 421 (0x1a5), region = 32  ;;  %s208_s30 = sand.u32 (!%p1263_p5), 1, %s1163_s13  }
  0x31   : > { %s953_s4 = sshll.u32 (!%p1263_p5), %s208_s30, 3  ;;  %s209_s5 = scalar_lea.sflag (!%p1263_p5), [#allocation3], %s208_s30 }
  0x32   : > { %s212_s6 = scalar_lea.vmem (!%p1263_p5), [#allocation2], %s953_s4 }
  0x35   : > { %1150 = dma.done.wait (%p1259_p4), %s209_s5, 128  }
  0x36   : > { %1152 = vsyncadd (%p1259_p4), %s209_s5, 4294967168 }
  0x37   : > { %1154 = dma.done.wait (%p1251_p1), [#allocation5], 512  }
  0x38   : > { %1156 = vsyncadd (%p1251_p1), [#allocation5], 4294966784  ;;  %v1185_v0 = vmov 0.0   ;;  %vm1186_vm0 = vmmov 0   ;;  %v269_v1 = vld [vmem:[#allocation4 + $0x18] sm:$0xff]  ;;  %v268_v2 = vld [vmem:[#allocation4 + $0x10] sm:$0xff]  ;;  %v352_v6 = vlaneseq }
  0x39   : > { %975 = vmatprep.subr.mxu0 %v1185_v0  ;;  %983 = vmatprep.mubr.msk.f32.mxu0 %vm1186_vm0, %v1185_v0  ;;  %v267_v3 = vld [vmem:[#allocation4 + $0x8] sm:$0xff]  ;;  %v266_v4 = vld [vmem:[#allocation4] sm:$0xff]  ;;  %v265_v5 = vld [vmem:[%s212_s6] sm:$0xff]  ;;  %vm277_vm1 = vcmask 261120   ;;  %v1187_v10 = vmov 1.0   ;;  %s1188_s21 = smov 104  }
  0x3a   : > { %976 = vmatpush3.msra.mxu0 %v269_v1  ;;  %v353_v7 = vand.u32 127, %v352_v6  ;;  %v956_v8 = vld [vmem:[%s1428_s2] ss:$0 sm:$0xff]  ;;  %s1189_s7 = smov 120   ;;  %s1190_s8 = smov 96   ;;  %v399_v20 = vshrl.u32 %v352_v6, 7 }
  0x3b   : > { %977 = vmatprep.subr.mxu0 %v1185_v0  ;;  %s1191_s10 = smov 112   ;;  %s1192_s11 = smov 80   ;;  %v1199_v15 = vmov 1983009808   ;;  %v1200_v17 = vmov 1934713408  }
  0x3c   : > { %978 = vmatpush3.msra.mxu0 %v268_v2  ;;  %vm356_vm2 = vcmp.lt.s32.totalorder %v353_v7, 32  ;;  %s1193_s12 = smov 88   ;;  %s1194_s18 = smov 64   ;;  %v396_v16 = vunpack.c.l.s4 %v1199_v15  ;;  %v460_v18 = vunpack.c.l.s4 %v1200_v17  ;;  %vm801_vm3 = vcmask 64512  }
  0x3d   : > { %979 = vmatprep.subr.mxu0 %v1185_v0  ;;  %v357_v11 = vsel %vm356_vm2, 0.35355338, %v1187_v10  ;;  %s1195_s22 = smov 72   ;;  %s1196_s23 = smov 48  }
  0x3e   : > { %980 = vmatpush3.msra.mxu0 %v267_v3  ;;  %s1197_s24 = smov 56   ;;  %s1198_s26 = smov 40   ;;  %v397_v19 = vunpack.c.0.s8 %v396_v16  ;;  %v461_v23 = vunpack.c.0.s8 %v460_v18 }
  0x3f   : > { %981 = vmatprep.subr.mxu0 %v1185_v0  ;;  %p253_p1 = scmp.lt.s32.totalorder %s1171_s15, 1 }
  0x40   : > { %982 = vmatpush3.msra.mxu0 %v266_v4  ;;  %v1322_v24 = vsub.s32 %v397_v19, %v399_v20  ;;  %v1324_v31 = vsub.s32 %v461_v23, %v399_v20 }
  0x41   : > { %984 = vmatmul.mubr.msk.f32.vlgmr.msra.gmra.mxu0 %vm277_vm1, %v265_v5  ;;  %s1443_s15 = smov (!%p253_p1, %s1171_s15), 1 }
  0x42   : > { %s986_s27 = smul.u32 96, %s1443_s15 }
  0x44   : > { %s1354_s29 = scalar_lea.vmem %s1429_s3, %s986_s27 }
 0x101   : > { %v347_v9 = vpop.f32.mrf.mxu0 }
 0x102   : > { %v348_v12 = vadd.f32 %v956_v8, %v347_v9 }
 0x103   : > { %v985_v13 = vpop.f32.mrf.mxu0 }
 0x104   : > { %v358_v14 = vmul.f32 %v357_v11, %v348_v12 }
 0x106   : > { %366 = vrot.lane.b32.xlu1 %v358_v14, %s1188_s21  ;;  %360 = vrot.lane.b32.xlu0 %v358_v14, %s1189_s7 }
 0x10a   : > { %369 = vrot.lane.b32.xlu1 %v358_v14, %s1190_s8  ;;  %363 = vrot.lane.b32.xlu0 %v358_v14, %s1191_s10 }
 0x10e   : > { %375 = vrot.lane.b32.xlu1 %v358_v14, %s1192_s11  ;;  %372 = vrot.lane.b32.xlu0 %v358_v14, %s1193_s12 }
 0x112   : > { %381 = vrot.lane.b32.xlu1 %v358_v14, %s1194_s18  ;;  %378 = vrot.lane.b32.xlu0 %v358_v14, %s1195_s22 }
 0x116   : > { %387 = vrot.lane.b32.xlu1 %v358_v14, %s1196_s23  ;;  %384 = vrot.lane.b32.xlu0 %v358_v14, %s1197_s24 }
 0x11a   : > { %390 = vrot.lane.b32.xlu0 %v358_v14, %s1198_s26 }
 0x178   : > { %v367_v21 = vpop.permute.xlu1 %366  ;;  %v361_v22 = vpop.permute.xlu0 %360 }
 0x179   : > { %v409_v25 = vcombine.low %v361_v22, %v367_v21  ;;  %v410_v26 = vcombine.high %v361_v22, %v367_v21 }
 0x17b   : > { %v417_v32 = vrot.slane %v409_v25, %v1322_v24  ;;  %v424_v33 = vrot.slane %v410_v26, %v1322_v24 }
 0x17c   : > { %v370_v27 = vpop.permute.xlu1 %369  ;;  %v364_v28 = vpop.permute.xlu0 %363 }
 0x17d   : > { %v393_v29 = vcombine.low %v358_v14, %v364_v28  ;;  %v394_v30 = vcombine.high %v358_v14, %v364_v28 }
 0x17f   : > { %v401_v34 = vrot.slane %v393_v29, %v1322_v24  ;;  %v408_v35 = vrot.slane %v394_v30, %v1322_v24 }
 0x180   : > { %v376_v36 = vpop.permute.xlu1 %375  ;;  %v373_v37 = vpop.permute.xlu0 %372 }
 0x181   : > { %v457_v38 = vcombine.low %v401_v34, %v417_v32  ;;  %v458_v39 = vcombine.high %v401_v34, %v417_v32  ;;  %v473_v40 = vcombine.low %v408_v35, %v424_v33  ;;  %v474_v41 = vcombine.high %v408_v35, %v424_v33 }
 0x182   : > { %v425_v46 = vcombine.low %v370_v27, %v376_v36  ;;  %v426_v47 = vcombine.high %v370_v27, %v376_v36 }
 0x183   : > { %v465_v42 = vrot.slane %v457_v38, %v1324_v31  ;;  %v472_v43 = vrot.slane %v458_v39, %v1324_v31  ;;  %v481_v44 = vrot.slane %v473_v40, %v1324_v31  ;;  %v488_v45 = vrot.slane %v474_v41, %v1324_v31 }
 0x184   : > { %v379_v48 = vpop.permute.xlu0 %378  ;;  %v382_v53 = vpop.permute.xlu1 %381  ;;  %v433_v60 = vrot.slane %v425_v46, %v1322_v24  ;;  %v440_v61 = vrot.slane %v426_v47, %v1322_v24 }
 0x185   : > { %v958_v49 = vcombine.low %v465_v42, %v472_v43  ;;  %v960_v50 = vcombine.high %v465_v42, %v472_v43  ;;  %v962_v51 = vcombine.low %v481_v44, %v488_v45  ;;  %v964_v52 = vcombine.high %v481_v44, %v488_v45 }
 0x186   : > { %v441_v54 = vcombine.low %v373_v37, %v379_v48  ;;  %v442_v55 = vcombine.high %v373_v37, %v379_v48 }
 0x187   : > { %v605_v56 = vrot.slane %v958_v49, %v1322_v24  ;;  %v621_v57 = vrot.slane %v960_v50, %v1322_v24  ;;  %v637_v58 = vrot.slane %v962_v51, %v1322_v24  ;;  %v653_v59 = vrot.slane %v964_v52, %v1322_v24 }
 0x188   : > { %v449_v62 = vrot.slane %v441_v54, %v1322_v24  ;;  %v456_v63 = vrot.slane %v442_v55, %v1322_v24  ;;  %v385_v0 = vpop.permute.xlu0 %384  ;;  %v388_v17 = vpop.permute.xlu1 %387 }
 0x189   : > { %v661_v1 = vcombine.low %v605_v56, %v621_v57  ;;  %v662_v2 = vcombine.high %v605_v56, %v621_v57  ;;  %v693_v3 = vcombine.low %v637_v58, %v653_v59  ;;  %v694_v4 = vcombine.high %v637_v58, %v653_v59 }
 0x18a   : > { %v489_v5 = vcombine.low %v433_v60, %v449_v62  ;;  %v490_v6 = vcombine.high %v433_v60, %v449_v62  ;;  %v505_v7 = vcombine.low %v440_v61, %v456_v63  ;;  %v506_v8 = vcombine.high %v440_v61, %v456_v63 }
 0x18b   : > { %v669_v9 = vrot.slane %v661_v1, %v1324_v31  ;;  %v676_v10 = vrot.slane %v662_v2, %v1324_v31  ;;  %v701_v11 = vrot.slane %v693_v3, %v1324_v31  ;;  %v708_v12 = vrot.slane %v694_v4, %v1324_v31 }
 0x18c   : > { %v497_v13 = vrot.slane %v489_v5, %v1324_v31  ;;  %v504_v14 = vrot.slane %v490_v6, %v1324_v31  ;;  %v513_v15 = vrot.slane %v505_v7, %v1324_v31  ;;  %v520_v16 = vrot.slane %v506_v8, %v1324_v31  ;;  %v391_v18 = vpop.permute.xlu0 %390 }
 0x18d   : > { %v725_v19 = vcombine.low %v669_v9, %v701_v11  ;;  %v726_v20 = vcombine.high %v669_v9, %v701_v11  ;;  %v727_v21 = vcombine.low %v676_v10, %v708_v12  ;;  %v728_v22 = vcombine.high %v676_v10, %v708_v12 }
 0x18e   : > { %v959_v23 = vcombine.low %v497_v13, %v504_v14  ;;  %v961_v25 = vcombine.high %v497_v13, %v504_v14  ;;  %v963_v26 = vcombine.low %v513_v15, %v520_v16  ;;  %v965_v27 = vcombine.high %v513_v15, %v520_v16 }
 0x18f   : > { %802 = vst.msk [vmem:[%s1354_s29] sm:$0xff] %vm801_vm3, %v725_v19  ;;  %803 = vst.msk [vmem:[%s1354_s29 + $0x8] sm:$0xff] %vm801_vm3, %v726_v20  ;;  %v529_v28 = vcombine.low %v382_v53, %v388_v17  ;;  %v530_v29 = vcombine.high %v382_v53, %v388_v17  ;;  %v545_v30 = vcombine.low %v385_v0, %v391_v18 }
 0x190   : > { %804 = vst.msk [vmem:[%s1354_s29 + $0x10] sm:$0xff] %vm801_vm3, %v727_v21  ;;  %805 = vst.msk [vmem:[%s1354_s29 + $0x18] sm:$0xff] %vm801_vm3, %v728_v22  ;;  %v546_v32 = vcombine.high %v385_v0, %v391_v18  ;;  %v612_v33 = vrot.slane %v959_v23, %v1322_v24  ;;  %v628_v34 = vrot.slane %v961_v25, %v1322_v24 }
 0x191   : > { %v644_v35 = vrot.slane %v963_v26, %v1322_v24  ;;  %v660_v36 = vrot.slane %v965_v27, %v1322_v24  ;;  %v537_v37 = vrot.slane %v529_v28, %v1322_v24  ;;  %v544_v38 = vrot.slane %v530_v29, %v1322_v24 }
 0x192   : > { %v553_v39 = vrot.slane %v545_v30, %v1322_v24  ;;  %v560_v40 = vrot.slane %v546_v32, %v1322_v24  ;;  %v677_v41 = vcombine.low %v612_v33, %v628_v34  ;;  %v678_v42 = vcombine.high %v612_v33, %v628_v34 }
 0x193   : > { %v709_v43 = vcombine.low %v644_v35, %v660_v36  ;;  %v710_v44 = vcombine.high %v644_v35, %v660_v36 }
 0x194   : > { %v561_v45 = vcombine.low %v537_v37, %v553_v39  ;;  %v562_v46 = vcombine.high %v537_v37, %v553_v39  ;;  %v577_v47 = vcombine.low %v544_v38, %v560_v40  ;;  %v578_v48 = vcombine.high %v544_v38, %v560_v40 }
 0x195   : > { %v685_v49 = vrot.slane %v677_v41, %v1324_v31  ;;  %v692_v50 = vrot.slane %v678_v42, %v1324_v31  ;;  %v717_v51 = vrot.slane %v709_v43, %v1324_v31  ;;  %v724_v52 = vrot.slane %v710_v44, %v1324_v31 }
 0x196   : > { %v569_v53 = vrot.slane %v561_v45, %v1324_v31  ;;  %v576_v54 = vrot.slane %v562_v46, %v1324_v31  ;;  %v585_v55 = vrot.slane %v577_v47, %v1324_v31  ;;  %v592_v56 = vrot.slane %v578_v48, %v1324_v31 }
 0x197   : > { %v729_v57 = vcombine.low %v685_v49, %v717_v51  ;;  %v730_v58 = vcombine.high %v685_v49, %v717_v51  ;;  %v731_v59 = vcombine.low %v692_v50, %v724_v52  ;;  %v732_v60 = vcombine.high %v692_v50, %v724_v52 }
 0x198   : > { %v733_v61 = vcombine.low %v569_v53, %v576_v54  ;;  %v966_v62 = vcombine.high %v569_v53, %v576_v54  ;;  %v749_v63 = vcombine.low %v585_v55, %v592_v56  ;;  %v967_v0 = vcombine.high %v585_v55, %v592_v56 }
 0x199   : > { %806 = vst.msk [vmem:[%s1354_s29 + $0x20] sm:$0xff] %vm801_vm3, %v729_v57  ;;  %807 = vst.msk [vmem:[%s1354_s29 + $0x28] sm:$0xff] %vm801_vm3, %v730_v58 }
 0x19a   : > { %808 = vst.msk [vmem:[%s1354_s29 + $0x30] sm:$0xff] %vm801_vm3, %v731_v59  ;;  %809 = vst.msk [vmem:[%s1354_s29 + $0x38] sm:$0xff] %vm801_vm3, %v732_v60  ;;  %v740_v1 = vrot.slane %v733_v61, %v1322_v24  ;;  %v748_v2 = vrot.slane %v966_v62, %v1322_v24  ;;  %v756_v3 = vrot.slane %v749_v63, %v1322_v24 }
 0x19b   : > { %v764_v4 = vrot.slane %v967_v0, %v1322_v24 }
 0x19c   : > { %v765_v5 = vcombine.low %v740_v1, %v748_v2  ;;  %v766_v6 = vcombine.high %v740_v1, %v748_v2 }
 0x19d   : > { %v781_v7 = vcombine.low %v756_v3, %v764_v4  ;;  %v782_v8 = vcombine.high %v756_v3, %v764_v4 }
 0x19e   : > { %v773_v9 = vrot.slane %v765_v5, %v1324_v31  ;;  %v780_v10 = vrot.slane %v766_v6, %v1324_v31 }
 0x19f   : > { %v789_v11 = vrot.slane %v781_v7, %v1324_v31  ;;  %v796_v12 = vrot.slane %v782_v8, %v1324_v31 }
 0x1a1   : > { %v797_v13 = vcombine.low %v773_v9, %v789_v11  ;;  %v798_v14 = vcombine.high %v773_v9, %v789_v11  ;;  %v799_v15 = vcombine.low %v780_v10, %v796_v12  ;;  %v800_v16 = vcombine.high %v780_v10, %v796_v12 }
 0x1a3   : > { %810 = vst.msk [vmem:[%s1354_s29 + $0x40] sm:$0xff] %vm801_vm3, %v797_v13  ;;  %811 = vst.msk [vmem:[%s1354_s29 + $0x48] sm:$0xff] %vm801_vm3, %v798_v14 }
 0x1a4   : > { %812 = vst.msk [vmem:[%s1354_s29 + $0x50] sm:$0xff] %vm801_vm3, %v799_v15  ;;  %813 = vst.msk [vmem:[%s1354_s29 + $0x58] sm:$0xff] %vm801_vm3, %v800_v16 }
 0x1a5 PF: > { %s17_s17 = sadd.s32 1, %s1179_s17   ;;  %s1435_s12 = smov %s1163_s13 }
 0x1a6   : > { %p14_p4 = scmp.ge.s32.totalorder %s17_s17, 4   ;;  %s1436_s13 = smov %s1167_s14 }
 0x1a7   : > { %s1437_s14 = smov %s1295_s9  ;;  %s1438_s15 = smov %s1175_s16 }
 0x1a8   : > { %s1439_s16 = smov %s1441_s25  ;;  %16 = sbr.rel (!%p14_p4) target bundleno = 5 (0x5), region = 80 }
 0x1ad   :  { %850 = vsyncpa [#allocation3], 1 }
 0x1ae   :  { %852 = vsyncpa [#allocation3 + $0x1], 1 }
 0x1af   :  { %853 = vsyncpa [#allocation5], 1 }

</bundles_post_ra>
